<compile_context>
chip_gen: v5e
topology: v5e:2x2
jax: 0.10.0
libtpu: 0.0.40
codegen_flags: <defaults>
</compile_context>

<pallas_src>
import functools

import jax
import jax.numpy as jnp
import numpy as np
from jax.experimental import pallas as pl
from jax.experimental.pallas import tpu as pltpu


# ----------------------------------------------------------------------------
# Offline parameter / operator construction (numpy, float64 for precision)
# ----------------------------------------------------------------------------
def _round_up(x: int, m: int) -> int:
    return (x + m - 1) // m * m


def dct_ii_ortho_matrix(p: int) -> np.ndarray:
    """Orthonormal DCT-II matrix D with D[k, n] = s_k * cos(pi*(n+0.5)*k/p).

    For norm='ortho', idct (DCT-III) is D^T, so idct_2d(X) = D^T @ X @ D.
    """
    n = np.arange(p)[None, :]
    k = np.arange(p)[:, None]
    D = np.cos(np.pi * (n + 0.5) * k / p)
    scale = np.full((p, 1), np.sqrt(2.0 / p))
    scale[0, 0] = np.sqrt(1.0 / p)
    return (scale * D).astype(np.float64)


def build_spectral_to_spatial(p: int, out_channels: int,
                              high_freqs=None, low2high_order=None) -> np.ndarray:
    """Operator T (C*hf, C*p*p): per-channel scatter/pad into the full spectrum
    followed by the 2D inverse DCT, block-diagonal over channels."""
    pp = p * p
    D = dct_ii_ortho_matrix(p)                        # (p, p)
    idct2 = np.kron(D, D)                             # (pp, pp): spec_flat @ idct2 = spatial_flat
    hf = high_freqs if high_freqs is not None else pp

    # Placement matrix P (hf, pp): where each projected coefficient lands in the
    # full flattened spectrum before the IDCT.
    P = np.zeros((hf, pp), dtype=np.float64)
    if low2high_order is not None:
        inv_order = np.argsort(np.asarray(low2high_order))
        positions = inv_order[-hf:]
        P[np.arange(hf), positions] = 1.0
    elif high_freqs is not None:
        pad = pp - hf                                  # F.pad(x, (pad, 0)) -> left-pad with zeros
        P[np.arange(hf), pad + np.arange(hf)] = 1.0
    else:
        P = np.eye(pp, dtype=np.float64)

    T_per_channel = P @ idct2                          # (hf, pp)
    eye_c = np.eye(out_channels, dtype=np.float64)
    return np.kron(eye_c, T_per_channel)               # (C*hf, C*pp)


def build_fused_params(weight, bias, patch_size, out_channels,
                       high_freqs=None, low2high_order=None, lane_multiple=128):
    """Fold the Linear into the constant scatter+IDCT operator.

    Returns (w_fused (E, out_dim_pad), b_fused (1, out_dim_pad), out_dim) where
    out_dim = C*p*p and out_dim_pad is rounded up to a multiple of 128 so the
    kernel output is lane-dense; the pad columns are exactly zero.
    """
    T = build_spectral_to_spatial(patch_size, out_channels, high_freqs, low2high_order)
    W = np.asarray(weight, dtype=np.float64)           # (in_dim, E), torch Linear layout
    b = np.asarray(bias, dtype=np.float64)             # (in_dim,)
    w_fused = W.T @ T                                   # (E, out_dim)
    b_fused = b @ T                                     # (out_dim,)
    out_dim = T.shape[1]
    out_dim_pad = _round_up(out_dim, lane_multiple)
    pad = out_dim_pad - out_dim
    if pad:
        w_fused = np.pad(w_fused, ((0, 0), (0, pad)))
        b_fused = np.pad(b_fused, (0, pad))
    return (jnp.asarray(w_fused, dtype=jnp.float32),
            jnp.asarray(b_fused.reshape(1, -1), dtype=jnp.float32),
            out_dim)


# ----------------------------------------------------------------------------
# Pallas kernel: out = x @ W_fused + b_fused   (single MXU pass, f32 accumulate)
# ----------------------------------------------------------------------------
def _decoder_kernel(x_ref, w_ref, b_ref, o_ref):
    acc = jnp.dot(x_ref[...], w_ref[...], preferred_element_type=jnp.float32)
    o_ref[...] = (acc + b_ref[...]).astype(o_ref.dtype)


@functools.partial(jax.jit,
                   static_argnames=("patch_size", "out_channels", "tile_m", "compute_dtype"))
def idct_patch_decoder(x, w_fused, b_fused, *, patch_size, out_channels,
                       tile_m=1024, compute_dtype=jnp.float32):
    """x: (B, N, embed_dim) -> (B, N, out_channels, patch_size, patch_size)."""
    B, N, E = x.shape
    out_dim = out_channels * patch_size * patch_size
    out_dim_pad = w_fused.shape[1]
    M = B * N

    cdt = jnp.dtype(compute_dtype)
    sublane = 16 if cdt == jnp.dtype(jnp.bfloat16) else 8

    # Row tile: as large as requested, but no larger than the (sublane-rounded)
    # token count, and always a sublane multiple.  Pad M up to a tile multiple.
    tile = min(int(tile_m), _round_up(M, sublane))
    tile = max(sublane, _round_up(tile, sublane))
    m_pad = _round_up(M, tile)

    x2d = x.reshape(M, E).astype(cdt)
    if m_pad != M:
        x2d = jnp.pad(x2d, ((0, m_pad - M), (0, 0)))
    w = w_fused.astype(cdt)

    grid = (m_pad // tile,)

    # VMEM budget derived from the actual pipelined buffers (double-buffered),
    # floored at the 32 MiB default so tiny demo tiles don't under-provision.
    vmem_bytes = (2 * tile * E * cdt.itemsize           # x tiles
                  + 2 * E * out_dim_pad * cdt.itemsize  # fused weight
                  + 2 * out_dim_pad * 4                 # fused bias
                  + 2 * tile * out_dim_pad * 4          # output tiles
                  + (2 << 20))                          # headroom
    vmem_bytes = max(int(vmem_bytes), 32 * 1024 * 1024)

    out2d = pl.pallas_call(
        _decoder_kernel,
        out_shape=jax.ShapeDtypeStruct((m_pad, out_dim_pad), jnp.float32),
        grid=grid,
        in_specs=[
            pl.BlockSpec((tile, E), lambda i: (i, 0)),            # token tile
            pl.BlockSpec((E, out_dim_pad), lambda i: (0, 0)),     # fused weight (resident)
            pl.BlockSpec((1, out_dim_pad), lambda i: (0, 0)),     # fused bias   (resident)
        ],
        out_specs=pl.BlockSpec((tile, out_dim_pad), lambda i: (i, 0)),
        compiler_params=pltpu.CompilerParams(
            dimension_semantics=("parallel",),          # shards M across TCs on v7x
            vmem_limit_bytes=vmem_bytes),
    )(x2d, w, b_fused)

    out2d = out2d[:M, :out_dim]                         # drop row / lane padding
    return out2d.reshape(B, N, out_channels, patch_size, patch_size)


# ----------------------------------------------------------------------------
# Pure-JAX reference (mirrors the PyTorch forward, default config)
# ----------------------------------------------------------------------------
def reference_forward(x, weight, bias, patch_size, out_channels):
    B, N, _ = x.shape
    p = patch_size
    C = out_channels
    y = jnp.einsum("bne,oe->bno", x, weight) + bias          # nn.Linear
    spec = y.reshape(B, N, C, p, p)
    D = jnp.asarray(dct_ii_ortho_matrix(p), dtype=jnp.float32)
    # idct_2d(X, norm='ortho') == D^T @ X @ D
    out = jnp.einsum("abckl,km,ln->abcmn", spec, D, D)
    return out


# ----------------------------------------------------------------------------
if __name__ == "__main__":
    # Small, deterministic config (defaults: high_freqs=None, low2high_order=None)
    patch_size = 4
    out_channels = 4
    embed_dim = 32
    B, N = 2, 8
    in_dim = out_channels * patch_size * patch_size          # 64

    key = jax.random.PRNGKey(0)
    kx, kw, kb = jax.random.split(key, 3)
    x = jax.random.normal(kx, (B, N, embed_dim), dtype=jnp.float32)
    # nn.Linear(embed_dim, in_dim): weight (in_dim, embed_dim), bias (in_dim,)
    weight = jax.random.normal(kw, (in_dim, embed_dim), dtype=jnp.float32) * 0.02
    bias = jax.random.normal(kb, (in_dim,), dtype=jnp.float32) * 0.02

    # Fold Linear + scatter/pad + 2D IDCT into one (E, out_dim_pad) operator.
    w_fused, b_fused, _ = build_fused_params(
        weight, bias, patch_size, out_channels, high_freqs=None, low2high_order=None)

    ref = jax.block_until_ready(
        reference_forward(x, weight, bias, patch_size, out_channels))

    # f32 path (tight check)
    out = idct_patch_decoder(
        x, w_fused, b_fused,
        patch_size=patch_size, out_channels=out_channels,
        tile_m=1024, compute_dtype=jnp.float32)
    out = jax.block_until_ready(out)
    assert out.shape == (B, N, out_channels, patch_size, patch_size), out.shape
    np.testing.assert_allclose(np.asarray(out), np.asarray(ref), atol=1e-4, rtol=1e-4)

    # bf16 operand path (f32 MXU accumulate) — recommended on v6e/v7x.
    out_bf16 = jax.block_until_ready(idct_patch_decoder(
        x, w_fused, b_fused,
        patch_size=patch_size, out_channels=out_channels,
        tile_m=1024, compute_dtype=jnp.bfloat16))
    np.testing.assert_allclose(np.asarray(out_bf16), np.asarray(ref), atol=2e-2, rtol=2e-2)

    print("KERNEL_OK")
</pallas_src>

<mosaic_0001>
module attributes {stable_mosaic.version = 11 : i64} {
  func.func @_decoder_kernel(%arg0: i32, %arg1: memref<16x32xf32, #tpu.memory_space<vmem>>, %arg2: memref<32x128xf32, #tpu.memory_space<vmem>>, %arg3: memref<1x128xf32, #tpu.memory_space<vmem>>, %arg4: memref<16x128xf32, #tpu.memory_space<vmem>>) attributes {dimension_semantics = [#tpu.dimension_semantics<parallel>], iteration_bounds = array<i64: 1>, scalar_prefetch = 0 : i64, scratch_operands = 0 : i64, tpu.core_type = #tpu.core_type<tc>, window_params = [{transform_indices = @transform_0, window_bounds = array<i64: 16, 32>}, {pipeline_mode = #tpu.pipeline_mode<synchronous>, transform_indices = @transform_1, window_bounds = array<i64: 32, 128>}, {pipeline_mode = #tpu.pipeline_mode<synchronous>, transform_indices = @transform_2, window_bounds = array<i64: 1, 128>}, {transform_indices = @transform_3, window_bounds = array<i64: 16, 128>}]} {
    %c0 = arith.constant 0 : index
    %c0_0 = arith.constant 0 : index
    %0 = vector.load %arg1[%c0, %c0_0] : memref<16x32xf32, #tpu.memory_space<vmem>>, vector<16x32xf32>
    %c0_1 = arith.constant 0 : index
    %c0_2 = arith.constant 0 : index
    %1 = vector.load %arg2[%c0_1, %c0_2] : memref<32x128xf32, #tpu.memory_space<vmem>>, vector<32x128xf32>
    %cst = arith.constant dense<0.000000e+00> : vector<16x128xf32>
    %2 = tpu.matmul %0, %1, %cst {dimension_numbers = #tpu.dot_dimension_numbers<[1], [0], [0], [1], [0, 0, 1, 1], [], []>} : vector<16x32xf32>, vector<32x128xf32>, vector<16x128xf32> -> vector<16x128xf32>
    %c0_3 = arith.constant 0 : index
    %c0_4 = arith.constant 0 : index
    %3 = vector.load %arg3[%c0_3, %c0_4] : memref<1x128xf32, #tpu.memory_space<vmem>>, vector<1x128xf32>
    %4 = vector.broadcast %3 : vector<1x128xf32> to vector<16x128xf32>
    %5 = arith.addf %2, %4 : vector<16x128xf32>
    %c0_5 = arith.constant 0 : index
    %c0_6 = arith.constant 0 : index
    %6 = vector.load %arg4[%c0_5, %c0_6] : memref<16x128xf32, #tpu.memory_space<vmem>>, vector<16x128xf32>
    tpu.vector_store %arg4[%c0_5, %c0_6], %5 {strides = array<i32>} : memref<16x128xf32, #tpu.memory_space<vmem>>, vector<16x128xf32>,
    return
  }
  func.func @transform_0(%arg0: i32) -> (i32, i32) {
    %c0_i32 = arith.constant 0 : i32
    %c0_i32_0 = arith.constant 0 : i32
    return %arg0, %c0_i32 : i32, i32
  }
  func.func @transform_1(%arg0: i32) -> (i32, i32) {
    %c0_i32 = arith.constant 0 : i32
    %c0_i32_0 = arith.constant 0 : i32
    %c0_i32_1 = arith.constant 0 : i32
    return %c0_i32, %c0_i32_0 : i32, i32
  }
  func.func @transform_2(%arg0: i32) -> (i32, i32) {
    %c0_i32 = arith.constant 0 : i32
    %c0_i32_0 = arith.constant 0 : i32
    %c0_i32_1 = arith.constant 0 : i32
    return %c0_i32, %c0_i32_0 : i32, i32
  }
  func.func @transform_3(%arg0: i32) -> (i32, i32) {
    %c0_i32 = arith.constant 0 : i32
    %c0_i32_0 = arith.constant 0 : i32
    return %arg0, %c0_i32 : i32, i32
  }
}

</mosaic_0001>

<bundles_post_ra>
// kernel: idct_patch_decoder.1
= control target key start
LH: loop header
LB: loop body
LE: loop exit
PB: predicated region body
PF: predicated region fallthrough
CT: control target
= control target key end

     0   :  { %8 = vsyncpa [#allocation3], 0  ;;  %s196_s0 = inlined_call_operand.hbm [shape: f32[16,32], index: 0, kind: input, shape index: {}]   ;;  %s197_s1 = inlined_call_operand.hbm [shape: f32[32,128], index: 1, kind: input, shape index: {}]   ;;  %s198_s2 = inlined_call_operand.vmem [shape: f32[1,128], index: 2, kind: input, shape index: {}]   ;;  %s199_s3 = inlined_call_operand.vmem [shape: f32[16,128], index: 3, kind: output, shape index: {}]  }
   0x1   :  { %s14_s14 = sshll.u32 %s196_s0, 4  ;;  %s15_s14 = int_to_ptr.hbm [resolvable:$true] %s14_s14 }
   0x2   :  { %9 = vsyncpa [#allocation5], 0  ;;  %s157_s15 = smov [#allocation2]   ;;  %s27_s19 = sshll.u32 %s197_s1, 4  ;;  %s28_s19 = int_to_ptr.hbm [resolvable:$true] %s27_s19 }
   0x3   :  { %s16_s16 = sshll.u32 %s157_s15, 4  ;;  %s158_s20 = smov 128   ;;  %s17_s16 = int_to_ptr.vmem [resolvable:$true] %s16_s16 }
   0x4   :  { %s159_s21 = smov 8   ;;  %s160_s22 = smov [#allocation4]  }
   0x5   :  { %22 = dma.hbm_to_vmem [thread:$0]  %s15_s14, 256, %s17_s16, [#allocation3], %s158_s20, %s158_s20, %s159_s21  }
   0x6   :  { %s29_s23 = sshll.u32 %s160_s22, 4  ;;  %s30_s23 = int_to_ptr.vmem [resolvable:$true] %s29_s23 }
   0x7   :  { %35 = dma.hbm_to_vmem [thread:$0]  %s28_s19, 512, %s30_s23, [#allocation5], %s158_s20, %s158_s20, %s159_s21  }
   0x8   :  { %153 = dma.done.wait [#allocation3], 256  }
   0x9   :  { %154 = vsyncadd [#allocation3], 4294967040 }
   0xa   :  { %155 = dma.done.wait [#allocation5], 512  }
   0xb   :  { %156 = vsyncadd [#allocation5], 4294966784  ;;  %v51_v0 = vld [vmem:[#allocation4 + $0x18] sm:$0xff]  ;;  %v50_v1 = vld [vmem:[#allocation4 + $0x10] sm:$0xff]  ;;  %vm56_vm0 = vcmask 261120  }
   0xc   :  { %75 = vmatpush.msra.mxu0 %v51_v0  ;;  %96 = vmatpush.msra.mxu1 %v51_v0  ;;  %v49_v2 = vld [vmem:[#allocation4 + $0x8] sm:$0xff]  ;;  %v48_v3 = vld [vmem:[#allocation4] sm:$0xff]  ;;  %v46_v4 = vld [vmem:[#allocation2] sm:$0xff] }
   0xd   :  { %v47_v5 = vld [vmem:[#allocation2 + $0x8] sm:$0xff]  ;;  %v104_v6 = vld [vmem:[%s198_s2] ss:$0 sm:$0xff] }
   0xe   :  { %76 = vmatpush.msra.mxu0 %v50_v1  ;;  %97 = vmatpush.msra.mxu1 %v50_v1 }
  0x10   :  { %77 = vmatpush.msra.mxu0 %v49_v2  ;;  %98 = vmatpush.msra.mxu1 %v49_v2 }
  0x12   :  { %78 = vmatpush.msra.mxu0 %v48_v3  ;;  %99 = vmatpush.msra.mxu1 %v48_v3 }
  0x13   :  { %94 = vmatmul.msk.f32.vlgmr.msra.gmra.mxu0 %vm56_vm0, %v46_v4  ;;  %95 = vmatmul.msk.f32.vlgmr.msra.gmra.mxu1 %vm56_vm0, %v47_v5 }
  0x90   :  { %v80_v7 = vpop.f32.mrf.mxu0  ;;  %v83_v8 = vpop.f32.mrf.mxu1 }
  0x91   :  { %v81_v9 = vadd.f32 %v104_v6, %v80_v7  ;;  %v84_v10 = vadd.f32 %v104_v6, %v83_v8 }
  0x93   :  { %86 = vst [vmem:[%s199_s3] sm:$0xff] %v81_v9 }
  0x94   :  { %87 = vst [vmem:[%s199_s3 + $0x8] sm:$0xff] %v84_v10 }
  0x95   :  { %92 = vsyncpa [#allocation3], 1 }
  0x96   :  { %93 = vsyncpa [#allocation5], 1 }

</bundles_post_ra>
